<compile_context>
chip_gen: v7x
topology: tpu7x:2x2x1
jax: 0.10.0
libtpu: 0.0.40
codegen_flags: <defaults>
</compile_context>

<pallas_src>
import functools

import jax
import jax.numpy as jnp
from jax.experimental import pallas as pl
from jax.experimental.pallas import tpu as pltpu


def _round_up(v, m):
    return ((v + m - 1) // m) * m


def _full_spec(shape):
    nd = len(shape)
    # Full-array block; index_map signature works with an empty grid.
    return pl.BlockSpec(shape, lambda *_: (0,) * nd)


# --------------------------------------------------------------------------- #
# Kernel
# --------------------------------------------------------------------------- #
def gcn_fused_kernel(adj_ref, dinv_ref, x_ref, w_ref, b_ref, out_ref, *, half):
    """Fully-fused dual-view 3-layer GCN forward on packed [N, 2*half] state.

    Per layer l (views a/b packed side-by-side in lanes):
        h      = state @ W_blk[l]                    ( = [ Xa Wa | Xb Wb ] )
        view2  = h + b[l]
        view1  = A_hat @ h + b[l]
        state  = relu(view1 + roll(view2, half) * D_inv)   # cross a<->b mixing
        out[:, l*pack:(l+1)*pack] = state                   # 128-aligned store
    """
    adj = adj_ref[...]                       # [N, N]
    d = dinv_ref[...]                        # [N, 1] -> broadcasts over lanes
    state = x_ref[...]                       # [N, pack]
    pack = 2 * half
    n_layers = w_ref.shape[0]

    for l in range(n_layers):                # tiny static unroll (3 layers)
        w = w_ref[l]                         # [pack, pack] block-diag [[Wa,0],[0,Wb]]
        b = b_ref[l]                         # [1, pack]   = [ba | bb] (zero-padded)
        h = jnp.dot(state, w, preferred_element_type=jnp.float32)        # [ha | hb]
        view2 = h + b                                                    # X W + b
        view1 = jnp.dot(adj, h, preferred_element_type=jnp.float32) + b  # A(XW) + b
        # Swap a/b halves of view2 via an XLU lane rotation (VALU/ld-st free).
        crossed = pltpu.roll(view2, shift=half, axis=1)
        state = jnp.maximum(view1 + crossed * d, 0.0)
        # Lane-dense, 128-aligned, unmasked store into the fused output slab.
        out_ref[:, l * pack:(l + 1) * pack] = state.astype(out_ref.dtype)


# --------------------------------------------------------------------------- #
# Host-side parameter packing (done once, outside the kernel)
# --------------------------------------------------------------------------- #
def pack_gcn_params(params, f_in, n_hid):
    """Pack 6 (W, b) pairs into block-diagonal per-layer slabs.

    half >= max(f_in, n_hid), multiple of 64 -> pack = 2*half is a multiple of 128.
    Layer weights: Wa at [0:F, 0:H], Wb at [half:half+F, half:half+H]; rest zero.
    """
    (w1, b1), (w2, b2), (w3, b3), (w4, b4), (w5, b5), (w6, b6) = params
    half = max(64, _round_up(max(n_hid, f_in), 64))
    pack = 2 * half

    def blk(wa, wb):
        w = jnp.zeros((pack, pack), jnp.float32)
        w = w.at[: wa.shape[0], : wa.shape[1]].set(wa)
        w = w.at[half: half + wb.shape[0], half: half + wb.shape[1]].set(wb)
        return w

    def bias(ba, bb):
        b = jnp.zeros((1, pack), jnp.float32)
        b = b.at[:, : ba.shape[1]].set(ba)
        b = b.at[:, half: half + bb.shape[1]].set(bb)
        return b

    w_stack = jnp.stack([blk(w1, w4), blk(w2, w5), blk(w3, w6)])        # [3,pack,pack]
    b_stack = jnp.stack([bias(b1, b4), bias(b2, b5), bias(b3, b6)])     # [3,1,pack]
    return {"w": w_stack, "b": b_stack, "half": half, "pack": pack, "n_hid": n_hid}


# --------------------------------------------------------------------------- #
# Wrapper
# --------------------------------------------------------------------------- #
def gcn_forward(packed, adj, d_inv, x, view2):
    """Mirrors GCN.forward: three layer pairs + concatenation, one pallas_call."""
    half, pack, H = packed["half"], packed["pack"], packed["n_hid"]
    w_stack, b_stack = packed["w"], packed["b"]
    n_layers = w_stack.shape[0]
    N, f_in = x.shape

    # Pack the two input views into one lane-padded slab: a at [0:f_in),
    # b at [half:half+f_in), zeros elsewhere (padding stays zero through layers).
    x_pack = jnp.zeros((N, pack), jnp.float32)
    x_pack = x_pack.at[:, :f_in].set(x).at[:, half: half + f_in].set(view2)

    kernel = functools.partial(gcn_fused_kernel, half=half)
    args = (adj, d_inv, x_pack, w_stack, b_stack)

    out = pl.pallas_call(
        kernel,
        out_shape=jax.ShapeDtypeStruct((N, n_layers * pack), jnp.float32),
        in_specs=[_full_spec(a.shape) for a in args],
        out_specs=_full_spec((N, n_layers * pack)),
    )(*args)

    # Cheap wrapper-side slicing of the lane-dense slab back to q / p.
    out_r = out.reshape(N, n_layers, pack)
    q = out_r[:, :, :H].reshape(N, n_layers * H)                  # [x1 | z1 | v1]
    p = out_r[:, :, half: half + H].reshape(N, n_layers * H)      # [x2 | z2 | v2]
    return q, p


# --------------------------------------------------------------------------- #
# Pure-JAX reference (HIGHEST precision) for correctness check
# --------------------------------------------------------------------------- #
def gcn_reference(params, adj, d_inv, x, view2):
    (w1, b1), (w2, b2), (w3, b3), (w4, b4), (w5, b5), (w6, b6) = params
    hp = jax.lax.Precision.HIGHEST

    def conv(xin, w, b):
        h = jnp.dot(xin, w, precision=hp)
        return jnp.dot(adj, h, precision=hp) + b, h + b

    def pair(xa, xb, wa, ba, wb, bb):
        v1a, v2a = conv(xa, wa, ba)
        v1b, v2b = conv(xb, wb, bb)
        o1 = jax.nn.relu(v1a + v2b * d_inv)
        o2 = jax.nn.relu(v1b + v2a * d_inv)
        return o1, o2

    x1, x2 = pair(x, view2, w1, b1, w4, b4)
    z1, z2 = pair(x1, x2, w2, b2, w5, b5)
    v1, v2 = pair(z1, z2, w3, b3, w6, b6)
    q = jnp.concatenate([x1, z1, v1], axis=1)
    p = jnp.concatenate([x2, z2, v2], axis=1)
    return q, p


# --------------------------------------------------------------------------- #
# Setup helpers
# --------------------------------------------------------------------------- #
def glorot_linear(key, fan_in, fan_out):
    limit = (6.0 / (fan_in + fan_out)) ** 0.5
    w = jax.random.uniform(key, (fan_in, fan_out), jnp.float32, -limit, limit)
    b = jnp.zeros((1, fan_out), jnp.float32)
    return w, b


def make_params(key, f_in, n_hid):
    keys = jax.random.split(key, 6)
    return (
        glorot_linear(keys[0], f_in, n_hid),   # conv1
        glorot_linear(keys[1], n_hid, n_hid),  # conv2
        glorot_linear(keys[2], n_hid, n_hid),  # conv3
        glorot_linear(keys[3], f_in, n_hid),   # conv4
        glorot_linear(keys[4], n_hid, n_hid),  # conv5
        glorot_linear(keys[5], n_hid, n_hid),  # conv6
    )


def build_graph(n_nodes):
    """Deterministic ring graph; returns (edge_index, A_hat, D_inv)."""
    idx = jnp.arange(n_nodes)
    edge_index = jnp.stack([idx, (idx + 1) % n_nodes])            # [2, N] directed ring
    src = jnp.concatenate([edge_index[0], edge_index[1]])
    dst = jnp.concatenate([edge_index[1], edge_index[0]])
    A = jnp.zeros((n_nodes, n_nodes), jnp.float32).at[src, dst].set(1.0)
    A = A + jnp.eye(n_nodes, dtype=jnp.float32)                   # self loops
    deg = A.sum(axis=1)
    d_is = deg ** -0.5
    adj_norm = d_is[:, None] * A * d_is[None, :]                  # D^-1/2 (A+I) D^-1/2
    d_inv = (1.0 / deg)[:, None]                                  # [N, 1]
    return edge_index, adj_norm, d_inv


if __name__ == "__main__":
    N = 16            # nodes
    n_features = 6
    n_graphfea = 2
    n_hid = 32
    f_in = n_features + n_graphfea

    key = jax.random.PRNGKey(0)
    k_params, k_x, k_v = jax.random.split(key, 3)

    params = make_params(k_params, f_in, n_hid)
    packed = pack_gcn_params(params, f_in, n_hid)
    edge_index, adj_norm, d_inv = build_graph(N)

    x = jax.random.normal(k_x, (N, f_in), jnp.float32)
    view2 = jax.random.normal(k_v, (N, f_in), jnp.float32)

    fwd = jax.jit(functools.partial(gcn_forward, packed))
    q, p = fwd(adj_norm, d_inv, x, view2)
    jax.block_until_ready((q, p))

    q_ref, p_ref = gcn_reference(params, adj_norm, d_inv, x, view2)

    assert q.shape == (N, 3 * n_hid) and p.shape == (N, 3 * n_hid)
    assert bool(jnp.all(jnp.isfinite(q))) and bool(jnp.all(jnp.isfinite(p)))
    assert bool(jnp.allclose(q, q_ref, atol=1e-3, rtol=1e-3))
    assert bool(jnp.allclose(p, p_ref, atol=1e-3, rtol=1e-3))
    print("KERNEL_OK")
</pallas_src>

<mosaic_0001>
module attributes {stable_mosaic.version = 11 : i64} {
  func.func @gcn_fused_kernel(%arg0: memref<16x16xf32, #tpu.memory_space<vmem>>, %arg1: memref<16x1xf32, #tpu.memory_space<vmem>>, %arg2: memref<16x128xf32, #tpu.memory_space<vmem>>, %arg3: memref<3x128x128xf32, #tpu.memory_space<vmem>>, %arg4: memref<3x1x128xf32, #tpu.memory_space<vmem>>, %arg5: memref<16x384xf32, #tpu.memory_space<vmem>>) attributes {dimension_semantics = [], scalar_prefetch = 0 : i64, scratch_operands = 0 : i64, tpu.core_type = #tpu.core_type<tc>} {
    %c0 = arith.constant 0 : index
    %c0_0 = arith.constant 0 : index
    %0 = vector.load %arg0[%c0, %c0_0] : memref<16x16xf32, #tpu.memory_space<vmem>>, vector<16x16xf32>
    %c0_1 = arith.constant 0 : index
    %c0_2 = arith.constant 0 : index
    %1 = vector.load %arg1[%c0_1, %c0_2] : memref<16x1xf32, #tpu.memory_space<vmem>>, vector<16x1xf32>
    %c0_3 = arith.constant 0 : index
    %c0_4 = arith.constant 0 : index
    %2 = vector.load %arg2[%c0_3, %c0_4] : memref<16x128xf32, #tpu.memory_space<vmem>>, vector<16x128xf32>
    %c0_5 = arith.constant 0 : index
    %c0_6 = arith.constant 0 : index
    %c0_7 = arith.constant 0 : index
    %3 = vector.load %arg3[%c0_5, %c0_6, %c0_7] : memref<3x128x128xf32, #tpu.memory_space<vmem>>, vector<1x128x128xf32>
    %4 = vector.shape_cast %3 : vector<1x128x128xf32> to vector<128x128xf32>
    %c0_8 = arith.constant 0 : index
    %c0_9 = arith.constant 0 : index
    %c0_10 = arith.constant 0 : index
    %5 = vector.load %arg4[%c0_8, %c0_9, %c0_10] : memref<3x1x128xf32, #tpu.memory_space<vmem>>, vector<1x1x128xf32>
    %6 = vector.shape_cast %5 : vector<1x1x128xf32> to vector<1x128xf32>
    %cst = arith.constant dense<0.000000e+00> : vector<16x128xf32>
    %7 = tpu.matmul %2, %4, %cst {dimension_numbers = #tpu.dot_dimension_numbers<[1], [0], [0], [1], [0, 0, 1, 1], [], []>} : vector<16x128xf32>, vector<128x128xf32>, vector<16x128xf32> -> vector<16x128xf32>
    %8 = vector.broadcast %6 : vector<1x128xf32> to vector<16x128xf32>
    %9 = arith.addf %7, %8 : vector<16x128xf32>
    %cst_11 = arith.constant dense<0.000000e+00> : vector<16x128xf32>
    %10 = tpu.matmul %0, %7, %cst_11 {dimension_numbers = #tpu.dot_dimension_numbers<[1], [0], [0], [1], [0, 0, 1, 1], [], []>} : vector<16x16xf32>, vector<16x128xf32>, vector<16x128xf32> -> vector<16x128xf32>
    %11 = vector.broadcast %6 : vector<1x128xf32> to vector<16x128xf32>
    %12 = arith.addf %10, %11 : vector<16x128xf32>
    %c64_i32 = arith.constant 64 : i32
    %13 = tpu.dynamic_rotate %9 by %c64_i32 dim 1 : vector<16x128xf32>, i32 -> vector<16x128xf32>
    %14 = vector.broadcast %1 : vector<16x1xf32> to vector<16x128xf32>
    %15 = arith.mulf %13, %14 : vector<16x128xf32>
    %16 = arith.addf %12, %15 : vector<16x128xf32>
    %cst_12 = arith.constant 0.000000e+00 : f32
    %17 = vector.broadcast %cst_12 : f32 to vector<16x128xf32>
    %18 = arith.maximumf %16, %17 : vector<16x128xf32>
    %c0_13 = arith.constant 0 : index
    %c0_14 = arith.constant 0 : index
    %19 = vector.load %arg5[%c0_13, %c0_14] : memref<16x384xf32, #tpu.memory_space<vmem>>, vector<16x128xf32>
    tpu.vector_store %arg5[%c0_13, %c0_14], %18 {strides = array<i32>} : memref<16x384xf32, #tpu.memory_space<vmem>>, vector<16x128xf32>,
    %c1 = arith.constant 1 : index
    %c0_15 = arith.constant 0 : index
    %c0_16 = arith.constant 0 : index
    %20 = vector.load %arg3[%c1, %c0_15, %c0_16] : memref<3x128x128xf32, #tpu.memory_space<vmem>>, vector<1x128x128xf32>
    %21 = vector.shape_cast %20 : vector<1x128x128xf32> to vector<128x128xf32>
    %c1_17 = arith.constant 1 : index
    %c0_18 = arith.constant 0 : index
    %c0_19 = arith.constant 0 : index
    %22 = vector.load %arg4[%c1_17, %c0_18, %c0_19] : memref<3x1x128xf32, #tpu.memory_space<vmem>>, vector<1x1x128xf32>
    %23 = vector.shape_cast %22 : vector<1x1x128xf32> to vector<1x128xf32>
    %cst_20 = arith.constant dense<0.000000e+00> : vector<16x128xf32>
    %24 = tpu.matmul %18, %21, %cst_20 {dimension_numbers = #tpu.dot_dimension_numbers<[1], [0], [0], [1], [0, 0, 1, 1], [], []>} : vector<16x128xf32>, vector<128x128xf32>, vector<16x128xf32> -> vector<16x128xf32>
    %25 = vector.broadcast %23 : vector<1x128xf32> to vector<16x128xf32>
    %26 = arith.addf %24, %25 : vector<16x128xf32>
    %cst_21 = arith.constant dense<0.000000e+00> : vector<16x128xf32>
    %27 = tpu.matmul %0, %24, %cst_21 {dimension_numbers = #tpu.dot_dimension_numbers<[1], [0], [0], [1], [0, 0, 1, 1], [], []>} : vector<16x16xf32>, vector<16x128xf32>, vector<16x128xf32> -> vector<16x128xf32>
    %28 = vector.broadcast %23 : vector<1x128xf32> to vector<16x128xf32>
    %29 = arith.addf %27, %28 : vector<16x128xf32>
    %c64_i32_22 = arith.constant 64 : i32
    %30 = tpu.dynamic_rotate %26 by %c64_i32_22 dim 1 : vector<16x128xf32>, i32 -> vector<16x128xf32>
    %31 = vector.broadcast %1 : vector<16x1xf32> to vector<16x128xf32>
    %32 = arith.mulf %30, %31 : vector<16x128xf32>
    %33 = arith.addf %29, %32 : vector<16x128xf32>
    %cst_23 = arith.constant 0.000000e+00 : f32
    %34 = vector.broadcast %cst_23 : f32 to vector<16x128xf32>
    %35 = arith.maximumf %33, %34 : vector<16x128xf32>
    %c0_24 = arith.constant 0 : index
    %c128 = arith.constant 128 : index
    %36 = vector.load %arg5[%c0_24, %c128] : memref<16x384xf32, #tpu.memory_space<vmem>>, vector<16x128xf32>
    tpu.vector_store %arg5[%c0_24, %c128], %35 {strides = array<i32>} : memref<16x384xf32, #tpu.memory_space<vmem>>, vector<16x128xf32>,
    %c2 = arith.constant 2 : index
    %c0_25 = arith.constant 0 : index
    %c0_26 = arith.constant 0 : index
    %37 = vector.load %arg3[%c2, %c0_25, %c0_26] : memref<3x128x128xf32, #tpu.memory_space<vmem>>, vector<1x128x128xf32>
    %38 = vector.shape_cast %37 : vector<1x128x128xf32> to vector<128x128xf32>
    %c2_27 = arith.constant 2 : index
    %c0_28 = arith.constant 0 : index
    %c0_29 = arith.constant 0 : index
    %39 = vector.load %arg4[%c2_27, %c0_28, %c0_29] : memref<3x1x128xf32, #tpu.memory_space<vmem>>, vector<1x1x128xf32>
    %40 = vector.shape_cast %39 : vector<1x1x128xf32> to vector<1x128xf32>
    %cst_30 = arith.constant dense<0.000000e+00> : vector<16x128xf32>
    %41 = tpu.matmul %35, %38, %cst_30 {dimension_numbers = #tpu.dot_dimension_numbers<[1], [0], [0], [1], [0, 0, 1, 1], [], []>} : vector<16x128xf32>, vector<128x128xf32>, vector<16x128xf32> -> vector<16x128xf32>
    %42 = vector.broadcast %40 : vector<1x128xf32> to vector<16x128xf32>
    %43 = arith.addf %41, %42 : vector<16x128xf32>
    %cst_31 = arith.constant dense<0.000000e+00> : vector<16x128xf32>
    %44 = tpu.matmul %0, %41, %cst_31 {dimension_numbers = #tpu.dot_dimension_numbers<[1], [0], [0], [1], [0, 0, 1, 1], [], []>} : vector<16x16xf32>, vector<16x128xf32>, vector<16x128xf32> -> vector<16x128xf32>
    %45 = vector.broadcast %40 : vector<1x128xf32> to vector<16x128xf32>
    %46 = arith.addf %44, %45 : vector<16x128xf32>
    %c64_i32_32 = arith.constant 64 : i32
    %47 = tpu.dynamic_rotate %43 by %c64_i32_32 dim 1 : vector<16x128xf32>, i32 -> vector<16x128xf32>
    %48 = vector.broadcast %1 : vector<16x1xf32> to vector<16x128xf32>
    %49 = arith.mulf %47, %48 : vector<16x128xf32>
    %50 = arith.addf %46, %49 : vector<16x128xf32>
    %cst_33 = arith.constant 0.000000e+00 : f32
    %51 = vector.broadcast %cst_33 : f32 to vector<16x128xf32>
    %52 = arith.maximumf %50, %51 : vector<16x128xf32>
    %c0_34 = arith.constant 0 : index
    %c256 = arith.constant 256 : index
    %53 = vector.load %arg5[%c0_34, %c256] : memref<16x384xf32, #tpu.memory_space<vmem>>, vector<16x128xf32>
    tpu.vector_store %arg5[%c0_34, %c256], %52 {strides = array<i32>} : memref<16x384xf32, #tpu.memory_space<vmem>>, vector<16x128xf32>,
    return
  }
}

</mosaic_0001>

<bundles_post_ra>
// kernel: gcn_forward.1
= control target key start
LH: loop header
LB: loop body
LE: loop exit
PB: predicated region body
PF: predicated region fallthrough
CT: control target
= control target key end

     0   :  { %10 = vsyncpa [#allocation3], 0  ;;  %s968_s18 = smov [#allocation2]   ;;  %s1092_s0 = inlined_call_operand.vmem [shape: f32[16,16], index: 0, kind: input, shape index: {}]   ;;  %s1093_s1 = inlined_call_operand.vmem [shape: f32[16,1], index: 1, kind: input, shape index: {}]   ;;  %s1094_s2 = inlined_call_operand.vmem [shape: f32[16,128], index: 2, kind: input, shape index: {}]   ;;  %s1095_s3 = inlined_call_operand.hbm [shape: f32[3,128,128], index: 3, kind: input, shape index: {}]   ;;  %s1096_s4 = inlined_call_operand.vmem [shape: f32[3,1,128], index: 4, kind: input, shape index: {}]   ;;  %s1097_s5 = inlined_call_operand.vmem [shape: f32[16,384], index: 5, kind: output, shape index: {}]  }
   0x1   :  { %s22_s19 = sshll.u32 %s968_s18, 4  ;;  %s944_s22 = scalar_lea.hbm %s1095_s3, 6144  ;;  %s23_s19 = int_to_ptr.vmem [resolvable:$true] %s22_s19 }
   0x2   :  { %p945_p0 = scmp.ne.s32.totalorder %s1095_s3, %s944_s22  ;;  %p948_p1 = scmp.lt.u32.totalorder %s944_s22, %s1095_s3 }
   0x4   :  { %p950_p2 = pnand %p948_p1, %p945_p0 }
   0x6   :  { %953 = shalt.err (!%p950_p2)
}
   0x7   :  { %s954_s27 = scalar_lea.vmem %s23_s19, 6144  ;;  %p959_p4 = scmp.lt.s32.totalorder %s23_s19, %s23_s19 }
   0x8   :  { %p955_p3 = scmp.ne.s32.totalorder %s23_s19, %s954_s27  ;;  %p960_p5 = scmp.lt.s32.totalorder %s954_s27, %s954_s27 }
   0xa   :  { %p961_p6 = por %p960_p5, %p959_p4 }
   0xc   :  { %p962_p7 = pnand %p961_p6, %p955_p3 }
   0xe   :  { %965 = shalt.err (!%p962_p7)
}
   0xf   :  { %s969_s28 = smov 128   ;;  %s970_s29 = smov 8  }
  0x10   :  { %28 = dma.hbm_to_vmem [thread:$0]  %s1095_s3, 6144, %s23_s19, [#allocation3], %s969_s28, %s969_s28, %s970_s29  }
  0x11   :  { %966 = dma.done.wait [#allocation3], 6144  }
  0x12   :  { %967 = vsyncadd [#allocation3], 4294961152  ;;  %v971_v0 = vmov 0   ;;  %v40_v1 = vld [vmem:[#allocation2] sm:$0xff]  ;;  %v41_v2 = vld [vmem:[#allocation2 + $0x8] sm:$0xff]  ;;  %vm140_vm0 = vcmask 130048  }
  0x13   :  { %943 = vset.pattern.permute.xlu0 %v971_v0  ;;  %v42_v3 = vld [vmem:[#allocation2 + $0x10] sm:$0xff]  ;;  %v830_v4 = vpack.c.bf16 %v41_v2, %v40_v1  ;;  %v43_v5 = vld [vmem:[#allocation2 + $0x18] sm:$0xff]  ;;  %v44_v7 = vld [vmem:[#allocation2 + $0x20] sm:$0xff] }
  0x14   :  { %v834_v6 = vpack.c.bf16 %v43_v5, %v42_v3  ;;  %v45_v8 = vld [vmem:[#allocation2 + $0x28] sm:$0xff]  ;;  %v38_v10 = vld [vmem:[%s1094_s2] sm:$0xff]  ;;  %v46_v11 = vld [vmem:[#allocation2 + $0x30] sm:$0xff] }
  0x15   :  { %831 = vmatprep.subr.bf16.mxu0 %v830_v4  ;;  %v838_v9 = vpack.c.bf16 %v45_v8, %v44_v7  ;;  %v47_v12 = vld [vmem:[#allocation2 + $0x38] sm:$0xff]  ;;  %736 = vmatprep.mubr.f32.mxu0 %v38_v10  ;;  %v36_v13 = vld [vmem:[%s1093_s1] sm:$0xff]  ;;  %v37_v14 = vld [vmem:[%s1093_s1 + $0x8] sm:$0xff] }
  0x16   :  { %833 = vmatpush3.bf16.msra.mxu0 %v830_v4  ;;  %228 = vperm.xlu0 %943, %v36_v13   ;;  %v842_v15 = vpack.c.bf16 %v47_v12, %v46_v11  ;;  %v48_v16 = vld [vmem:[#allocation2 + $0x40] sm:$0xff]  ;;  %v49_v17 = vld [vmem:[#allocation2 + $0x48] sm:$0xff]  ;;  %v50_v19 = vld [vmem:[#allocation2 + $0x50] sm:$0xff] }
  0x17   :  { %835 = vmatprep.subr.bf16.mxu0 %v834_v6  ;;  %v846_v18 = vpack.c.bf16 %v49_v17, %v48_v16  ;;  %v51_v20 = vld [vmem:[#allocation2 + $0x58] sm:$0xff]  ;;  %v52_v22 = vld [vmem:[#allocation2 + $0x60] sm:$0xff]  ;;  %v53_v23 = vld [vmem:[#allocation2 + $0x68] sm:$0xff] }
  0x18   :  { %v850_v21 = vpack.c.bf16 %v51_v20, %v50_v19  ;;  %v854_v24 = vpack.c.bf16 %v53_v23, %v52_v22  ;;  %v54_v25 = vld [vmem:[#allocation2 + $0x70] sm:$0xff]  ;;  %v55_v26 = vld [vmem:[#allocation2 + $0x78] sm:$0xff]  ;;  %v39_v28 = vld [vmem:[%s1094_s2 + $0x8] sm:$0xff]  ;;  %s972_s2 = smov 64  }
  0x19   :  { %v858_v27 = vpack.c.bf16 %v55_v26, %v54_v25  ;;  %v1030_v29 = vld [vmem:[%s1092_s0] sm:$0xff]  ;;  %v246_v32 = vld [vmem:[#allocation2 + $0x88] sm:$0xff]  ;;  %v247_v38 = vld [vmem:[#allocation2 + $0x90] sm:$0xff] }
  0x1a   :  { %837 = vmatpush3.bf16.msra.mxu0 %v834_v6  ;;  %233 = vperm.xlu0 %943, %v37_v14   ;;  %v627_v30 = vld [vmem:[%s1096_s4] ss:$0 sm:$0xff]  ;;  %v248_v39 = vld [vmem:[#allocation2 + $0x98] sm:$0xff]  ;;  %v1041_v40 = vld [vmem:[%s1092_s0 + $0x8] sm:$0xff] }
  0x1b   :  { %839 = vmatprep.subr.bf16.mxu0 %v838_v9  ;;  %743 = vmatprep.mubr.msk.f32.mxu1 %vm140_vm0, %v1030_v29  ;;  %v245_v31 = vld [vmem:[#allocation2 + $0x80] sm:$0xff]  ;;  %v870_v42 = vpack.c.bf16 %v248_v39, %v247_v38  ;;  %v250_v44 = vld [vmem:[#allocation2 + $0xa8] sm:$0xff]  ;;  %v251_v46 = vld [vmem:[#allocation2 + $0xb0] sm:$0xff] }
  0x1c   :  { %v866_v37 = vpack.c.bf16 %v246_v32, %v245_v31  ;;  %v249_v43 = vld [vmem:[#allocation2 + $0xa0] sm:$0xff]  ;;  %v252_v47 = vld [vmem:[#allocation2 + $0xb8] sm:$0xff]  ;;  %v254_v50 = vld [vmem:[#allocation2 + $0xc8] sm:$0xff] }
  0x1d   :  { %v874_v45 = vpack.c.bf16 %v250_v44, %v249_v43  ;;  %v878_v48 = vpack.c.bf16 %v252_v47, %v251_v46  ;;  %v253_v49 = vld [vmem:[#allocation2 + $0xc0] sm:$0xff]  ;;  %v255_v52 = vld [vmem:[#allocation2 + $0xd0] sm:$0xff]  ;;  %v256_v53 = vld [vmem:[#allocation2 + $0xd8] sm:$0xff] }
  0x1e   :  { %841 = vmatpush3.bf16.msra.mxu0 %v838_v9  ;;  %v882_v51 = vpack.c.bf16 %v254_v50, %v253_v49  ;;  %v886_v54 = vpack.c.bf16 %v256_v53, %v255_v52  ;;  %v257_v55 = vld [vmem:[#allocation2 + $0xe0] sm:$0xff]  ;;  %v258_v56 = vld [vmem:[#allocation2 + $0xe8] sm:$0xff]  ;;  %v259_v58 = vld [vmem:[#allocation2 + $0xf0] sm:$0xff] }
  0x1f   :  { %843 = vmatprep.subr.bf16.mxu0 %v842_v15  ;;  %v890_v57 = vpack.c.bf16 %v258_v56, %v257_v55  ;;  %v260_v59 = vld [vmem:[#allocation2 + $0xf8] sm:$0xff]  ;;  %v434_v11 = vld [vmem:[#allocation2 + $0x100] sm:$0xff]  ;;  %v435_v12 = vld [vmem:[#allocation2 + $0x108] sm:$0xff] }
  0x20   :  { %v894_v60 = vpack.c.bf16 %v260_v59, %v259_v58  ;;  %v436_v13 = vld [vmem:[#allocation2 + $0x110] sm:$0xff]  ;;  %v902_v14 = vpack.c.bf16 %v435_v12, %v434_v11  ;;  %v438_v17 = vld [vmem:[#allocation2 + $0x120] sm:$0xff]  ;;  %v441_v22 = vld [vmem:[#allocation2 + $0x138] sm:$0xff] }
  0x21   :  { %v631_v20 = vld [vmem:[%s1096_s4 + $0x1] ss:$0 sm:$0xff]  ;;  %v448_v39 = vld [vmem:[#allocation2 + $0x170] sm:$0xff] }
  0x22   :  { %845 = vmatpush3.bf16.msra.mxu0 %v842_v15  ;;  %v437_v15 = vld [vmem:[#allocation2 + $0x118] sm:$0xff] }
  0x23   :  { %847 = vmatprep.subr.bf16.mxu0 %v846_v18  ;;  %v906_v16 = vpack.c.bf16 %v437_v15, %v436_v13 }
  0x26   :  { %849 = vmatpush3.bf16.msra.mxu0 %v846_v18  ;;  %v439_v18 = vld [vmem:[#allocation2 + $0x128] sm:$0xff] }
  0x27   :  { %851 = vmatprep.subr.bf16.mxu0 %v850_v21  ;;  %v910_v19 = vpack.c.bf16 %v439_v18, %v438_v17 }
  0x2a   :  { %853 = vmatpush3.bf16.msra.mxu0 %v850_v21  ;;  %v440_v21 = vld [vmem:[#allocation2 + $0x130] sm:$0xff] }
  0x2b   :  { %855 = vmatprep.subr.bf16.mxu0 %v854_v24  ;;  %v914_v26 = vpack.c.bf16 %v441_v22, %v440_v21 }
  0x2e   :  { %857 = vmatpush3.bf16.msra.mxu0 %v854_v24 }
  0x2f   :  { %859 = vmatprep.subr.bf16.mxu0 %v858_v27 }
  0x32   :  { %861 = vmatpush3.bf16.msra.mxu0 %v858_v27  ;;  %v442_v27 = vld [vmem:[#allocation2 + $0x140] sm:$0xff] }
  0x33   :  { %903 = vmatprep.subr.bf16.mxu0 %v902_v14 }
  0x35   :  { %737 = vmatmul.mubr.f32.vlgmr.msra.gmra.mrb[0].mxu0 %v39_v28  ;;  %v443_v28 = vld [vmem:[#allocation2 + $0x148] sm:$0xff] }
  0x36   :  { %905 = vmatpush3.bf16.msra.mxu0 %v902_v14  ;;  %v918_v32 = vpack.c.bf16 %v443_v28, %v442_v27 }
  0x37   :  { %907 = vmatprep.subr.bf16.mxu0 %v906_v16 }
  0x3a   :  { %909 = vmatpush3.bf16.msra.mxu0 %v906_v16 }
  0x3b   :  { %911 = vmatprep.subr.bf16.mxu0 %v910_v19 }
  0x3e   :  { %913 = vmatpush3.bf16.msra.mxu0 %v910_v19 }
  0x3f   :  { %915 = vmatprep.subr.bf16.mxu0 %v914_v26 }
  0x42   :  { %917 = vmatpush3.bf16.msra.mxu0 %v914_v26 }
  0x43   :  { %919 = vmatprep.subr.bf16.mxu0 %v918_v32 }
  0x46   :  { %921 = vmatpush3.bf16.msra.mxu0 %v918_v32 }
  0x95   :  { %v1046_v62 = vpop.permute.xlu0 %228 }
  0x99   :  { %v1048_v0 = vpop.permute.xlu0 %233 }
 0x108   :  { %v738_v33 = vpop.f32.mrb[0].mxu0 }
 0x109   :  { %v123_v34 = vpop.f32.mrb[1].mxu0  ;;  %v139_v41 = vadd.f32 %v738_v33, %v627_v30 }
 0x10a   :  { %v138_v35 = vadd.f32 %v627_v30, %v123_v34  ;;  %v862_v36 = vpack.c.bf16 %v738_v33, %v123_v34  ;;  %v444_v33 = vld [vmem:[#allocation2 + $0x150] sm:$0xff]  ;;  %v445_v34 = vld [vmem:[#allocation2 + $0x158] sm:$0xff] }
 0x10c   :  { %222 = vrot.lane.b32.xlu1 %v138_v35, %s972_s2  ;;  %863 = vmatprep.subr.bf16.mxu1 %v862_v36  ;;  %v922_v35 = vpack.c.bf16 %v445_v34, %v444_v33 }
 0x10d   :  { %865 = vmatpush3.bf16.msra.mxu1 %v862_v36  ;;  %v446_v36 = vld [vmem:[#allocation2 + $0x160] sm:$0xff] }
 0x10e   :  { %867 = vmatprep.subr.bf16.mxu1 %v866_v37  ;;  %923 = vmatprep.subr.bf16.mxu0 %v922_v35 }
 0x10f   :  { %925 = vmatpush3.bf16.msra.mxu0 %v922_v35 }
 0x110   :  { %224 = vrot.lane.b32.xlu1 %v139_v41, %s972_s2  ;;  %744 = vmatmul.mubr.msk.f32.vlgmr.msra.gmra.mrb[0].mxu1 %vm140_vm0, %v1041_v40  ;;  %v449_v41 = vld [vmem:[#allocation2 + $0x178] sm:$0xff] }
 0x111   :  { %869 = vmatpush3.bf16.msra.mxu1 %v866_v37  ;;  %v447_v37 = vld [vmem:[#allocation2 + $0x168] sm:$0xff] }
 0x112   :  { %871 = vmatprep.subr.bf16.mxu1 %v870_v42  ;;  %v926_v38 = vpack.c.bf16 %v447_v37, %v446_v36 }
 0x114   :  { %927 = vmatprep.subr.bf16.mxu0 %v926_v38 }
 0x115   :  { %873 = vmatpush3.bf16.msra.mxu1 %v870_v42  ;;  %929 = vmatpush3.bf16.msra.mxu0 %v926_v38  ;;  %v930_v42 = vpack.c.bf16 %v449_v41, %v448_v39 }
 0x116   :  { %875 = vmatprep.subr.bf16.mxu1 %v874_v45 }
 0x117   :  { %931 = vmatprep.subr.bf16.mxu0 %v930_v42 }
 0x119   :  { %877 = vmatpush3.bf16.msra.mxu1 %v874_v45  ;;  %933 = vmatpush3.bf16.msra.mxu0 %v930_v42 }
 0x11a   :  { %879 = vmatprep.subr.bf16.mxu1 %v878_v48 }
 0x11d   :  { %881 = vmatpush3.bf16.msra.mxu1 %v878_v48 }
 0x11e   :  { %883 = vmatprep.subr.bf16.mxu1 %v882_v51 }
 0x121   :  { %885 = vmatpush3.bf16.msra.mxu1 %v882_v51 }
 0x122   :  { %887 = vmatprep.subr.bf16.mxu1 %v886_v54 }
 0x125   :  { %889 = vmatpush3.bf16.msra.mxu1 %v886_v54  ;;  %v635_v54 = vld [vmem:[%s1096_s4 + $0x2] ss:$0 sm:$0xff] }
 0x126   :  { %891 = vmatprep.subr.bf16.mxu1 %v890_v57 }
 0x129   :  { %893 = vmatpush3.bf16.msra.mxu1 %v890_v57 }
 0x12a   :  { %895 = vmatprep.subr.bf16.mxu1 %v894_v60 }
 0x12d   :  { %897 = vmatpush3.bf16.msra.mxu1 %v894_v60 }
 0x17e   :  { %v223_v61 = vpop.permute.xlu1 %222 }
 0x17f   :  { %v236_v5 = vmul.f32 %v1046_v62, %v223_v61 }
 0x182   :  { %v225_v63 = vpop.permute.xlu1 %224 }
 0x183   :  { %v237_v2 = vmul.f32 %v1048_v0, %v225_v63 }
 0x1e3   :  { %v745_v1 = vpop.f32.mrb[0].mxu1 }
 0x1e4   :  { %v219_v3 = vadd.f32 %v745_v1, %v627_v30  ;;  %v213_v4 = vpop.f32.mrb[1].mxu1 }
 0x1e5   :  { %v214_v6 = vadd.f32 %v627_v30, %v213_v4 }
 0x1e6   :  { %v239_v7 = vadd.f32 %v237_v2, %v219_v3 }
 0x1e7   :  { %v238_v8 = vadd.f32 %v236_v5, %v214_v6 }
 0x1e8   :  { %v241_v9 = vmax.f32 %v239_v7, 0.0 }
 0x1e9   :  { %v240_v10 = vmax.f32 %v238_v8, 0.0 }
 0x1ea   :  { %243 = vst [vmem:[%s1097_s5 + $0x18] sm:$0xff] %v241_v9 }
 0x1eb   :  { %242 = vst [vmem:[%s1097_s5] sm:$0xff] %v240_v10  ;;  %778 = vmatprep.mubr.f32.mxu1 %v240_v10 }
 0x1ec   :  { %779 = vmatmul.mubr.f32.vlgmr.msra.gmra.mrb[2].mxu1 %v241_v9 }
 0x1ed   :  { %785 = vmatprep.mubr.msk.f32.mxu1 %vm140_vm0, %v1030_v29 }
 0x2bf   :  { %v780_v23 = vpop.f32.mrb[2].mxu1 }
 0x2c0   :  { %v345_v24 = vadd.f32 %v780_v23, %v631_v20  ;;  %v329_v25 = vpop.f32.mrb[3].mxu1 }
 0x2c1   :  { %v898_v30 = vpack.c.bf16 %v780_v23, %v329_v25  ;;  %v344_v31 = vadd.f32 %v631_v20, %v329_v25 }
 0x2c2   :  { %423 = vrot.lane.b32.xlu1 %v345_v24, %s972_s2 }
 0x2c3   :  { %421 = vrot.lane.b32.xlu0 %v344_v31, %s972_s2  ;;  %899 = vmatprep.subr.bf16.mxu1 %v898_v30 }
 0x2c4   :  { %901 = vmatpush3.bf16.msra.mxu1 %v898_v30 }
 0x2c7   :  { %786 = vmatmul.mubr.msk.f32.vlgmr.msra.gmra.mrb[4].mxu1 %vm140_vm0, %v1041_v40 }
 0x2c8   :  { %827 = vmatprep.mubr.msk.f32.mxu1 %vm140_vm0, %v1030_v29 }
 0x334   :  { %v424_v43 = vpop.permute.xlu1 %423 }
 0x335   :  { %v422_v44 = vpop.permute.xlu0 %421  ;;  %v426_v46 = vmul.f32 %v424_v43, %v1048_v0 }
 0x336   :  { %v425_v48 = vmul.f32 %v422_v44, %v1046_v62 }
 0x39a   :  { %v787_v45 = vpop.f32.mrb[4].mxu1 }
 0x39b   :  { %v418_v47 = vadd.f32 %v787_v45, %v631_v20  ;;  %v412_v29 = vpop.f32.mrb[5].mxu1 }
 0x39c   :  { %v413_v49 = vadd.f32 %v631_v20, %v412_v29 }
 0x39d   :  { %v428_v50 = vadd.f32 %v426_v46, %v418_v47 }
 0x39e   :  { %v427_v51 = vadd.f32 %v425_v48, %v413_v49 }
 0x39f   :  { %v430_v52 = vmax.f32 %v428_v50, 0.0 }
 0x3a0   :  { %v429_v53 = vmax.f32 %v427_v51, 0.0 }
 0x3a1   :  { %432 = vst [vmem:[%s1097_s5 + $0x20] sm:$0xff] %v430_v52 }
 0x3a2   :  { %431 = vst [vmem:[%s1097_s5 + $0x8] sm:$0xff] %v429_v53  ;;  %820 = vmatprep.mubr.f32.mxu0 %v429_v53 }
 0x3a3   :  { %821 = vmatmul.mubr.f32.vlgmr.msra.gmra.mrb[2].mxu0 %v430_v52 }
 0x476   :  { %v822_v55 = vpop.f32.mrb[2].mxu0 }
 0x477   :  { %v534_v56 = vadd.f32 %v822_v55, %v635_v54  ;;  %v518_v57 = vpop.f32.mrb[3].mxu0 }
 0x478   :  { %v934_v58 = vpack.c.bf16 %v822_v55, %v518_v57  ;;  %v533_v59 = vadd.f32 %v635_v54, %v518_v57 }
 0x479   :  { %612 = vrot.lane.b32.xlu1 %v534_v56, %s972_s2 }
 0x47a   :  { %610 = vrot.lane.b32.xlu0 %v533_v59, %s972_s2  ;;  %935 = vmatprep.subr.bf16.mxu1 %v934_v58 }
 0x47b   :  { %937 = vmatpush3.bf16.msra.mxu1 %v934_v58 }
 0x47e   :  { %828 = vmatmul.mubr.msk.f32.vlgmr.msra.gmra.mrb[6].mxu1 %vm140_vm0, %v1041_v40 }
 0x4eb   :  { %v613_v60 = vpop.permute.xlu1 %612 }
 0x4ec   :  { %v611_v61 = vpop.permute.xlu0 %610  ;;  %v615_v1 = vmul.f32 %v613_v60, %v1048_v0 }
 0x4ed   :  { %v614_v4 = vmul.f32 %v611_v61, %v1046_v62 }
 0x551   :  { %v829_v63 = vpop.f32.mrb[6].mxu1 }
 0x552   :  { %v607_v2 = vadd.f32 %v829_v63, %v635_v54  ;;  %v601_v3 = vpop.f32.mrb[7].mxu1 }
 0x553   :  { %v602_v5 = vadd.f32 %v635_v54, %v601_v3 }
 0x554   :  { %v617_v6 = vadd.f32 %v615_v1, %v607_v2 }
 0x555   :  { %v616_v7 = vadd.f32 %v614_v4, %v602_v5 }
 0x556   :  { %v619_v8 = vmax.f32 %v617_v6, 0.0 }
 0x557   :  { %v618_v9 = vmax.f32 %v616_v7, 0.0 }
 0x558   :  { %621 = vst [vmem:[%s1097_s5 + $0x28] sm:$0xff] %v619_v8 }
 0x559   :  { %620 = vst [vmem:[%s1097_s5 + $0x10] sm:$0xff] %v618_v9 }
 0x55a   :  { %626 = vsyncpa [#allocation3], 1 }

</bundles_post_ra>
